<compile_context>
chip_gen: v6e
topology: v6e:2x2x1
jax: 0.10.0
libtpu: 0.0.40
codegen_flags: <defaults>
</compile_context>

<pallas_src>
import functools

import jax
import jax.numpy as jnp
from jax.experimental import pallas as pl
from jax.experimental.pallas import tpu as pltpu


def _ca_kernel(x_ref, w1_ref, b1_ref, w2_ref, b2_ref, o_ref, *, bt, hw, hwp):
    # x_ref block: (bt, C, HWp) — C on sublanes, flattened spatial on lanes.
    inv_hw = 1.0 / float(hw)
    need_mask = hwp != hw

    w1 = w1_ref[...]          # (hid, C)
    b1 = b1_ref[...]          # (hid, 1)
    w2 = w2_ref[...]          # (C, hid)
    b2 = b2_ref[...]          # (C, 1)

    xs = []
    avg_cols = []
    max_cols = []
    for b in range(bt):
        xb = x_ref[b]                                                     # (C, HWp)
        xs.append(xb)
        # sum shares the same loads as max; padded lanes are zero so the sum is exact.
        avg_cols.append(jnp.sum(xb, axis=-1, keepdims=True) * inv_hw)     # (C, 1)
        if need_mask:
            lane = jax.lax.broadcasted_iota(jnp.int32, xb.shape, 1)
            xb_m = jnp.where(lane < hw, xb, -jnp.inf)
        else:
            xb_m = xb
        max_cols.append(jnp.max(xb_m, axis=-1, keepdims=True))            # (C, 1)

    # Fused MLP: one matmul pair for all (avg, max) x (batch) columns.
    pools = jnp.concatenate(avg_cols + max_cols, axis=1)                  # (C, 2*bt)
    h = jnp.dot(w1, pools, preferred_element_type=jnp.float32) + b1       # (hid, 2*bt)
    h = jnp.maximum(h, 0.0)
    a = jnp.dot(w2, h, preferred_element_type=jnp.float32) + b2           # (C, 2*bt)

    att = a[:, :bt] + a[:, bt:]                                           # (C, bt)
    scale = jax.nn.sigmoid(att)                                           # (C, bt)

    # Broadcast each column of `scale` over the lane (spatial) axis of its batch slab.
    for b in range(bt):
        o_ref[b] = xs[b] * scale[:, b:b + 1]


def channel_attention(x, W1, b1, W2, b2, *, vmem_limit_bytes=48 * 1024 * 1024):
    """x: (B, C, H, W) f32.  W1: (hid, C), b1: (hid,), W2: (C, hid), b2: (C,)."""
    B, C, H, Wd = x.shape
    HW = H * Wd
    hid = W1.shape[0]

    # Lane-dense flattened spatial dim (pad to a multiple of 128 with zeros).
    HWp = ((HW + 127) // 128) * 128
    xf = x.reshape(B, C, HW)
    if HWp != HW:
        xf = jnp.pad(xf, ((0, 0), (0, 0), (0, HWp - HW)))

    # --- choose batch tile Bt ---
    # keep per-block x slab <= ~4 MiB so 2 in + 2 out double-buffers stay well under the
    # tightest default scoped VMEM (v5e 16 MiB); keep grid >= 2 when B >= 2 so v7x's two
    # TensorCores both get work under dimension_semantics=("parallel",).
    bytes_per_b = C * HWp * 4
    budget = 4 * 1024 * 1024
    max_bt_mem = max(1, budget // bytes_per_b)
    max_bt_grid = max(1, B // 2) if B >= 2 else 1
    bt_cap = int(min(B, max_bt_mem, max_bt_grid))
    Bt = max(d for d in range(1, bt_cap + 1) if B % d == 0)
    grid = (B // Bt,)

    b1c = b1.reshape(hid, 1).astype(jnp.float32)
    b2c = b2.reshape(C, 1).astype(jnp.float32)

    kernel = functools.partial(_ca_kernel, bt=Bt, hw=HW, hwp=HWp)

    cost = pl.CostEstimate(
        flops=int(2 * B * C * HW + 8 * B * C * hid),
        transcendentals=int(B * C),
        bytes_accessed=int(2 * B * C * HW * 4
                           + 4 * (W1.size + W2.size + b1.size + b2.size)),
    )

    out = pl.pallas_call(
        kernel,
        out_shape=jax.ShapeDtypeStruct((B, C, HWp), x.dtype),
        grid_spec=pltpu.PrefetchScalarGridSpec(
            num_scalar_prefetch=0,
            grid=grid,
            in_specs=[
                pl.BlockSpec((Bt, C, HWp), lambda i: (i, 0, 0)),   # x, Bt batches/step
                pl.BlockSpec((hid, C), lambda i: (0, 0)),          # W1
                pl.BlockSpec((hid, 1), lambda i: (0, 0)),          # b1
                pl.BlockSpec((C, hid), lambda i: (0, 0)),          # W2
                pl.BlockSpec((C, 1), lambda i: (0, 0)),            # b2
            ],
            out_specs=pl.BlockSpec((Bt, C, HWp), lambda i: (i, 0, 0)),
        ),
        compiler_params=pltpu.CompilerParams(
            dimension_semantics=("parallel",),
            vmem_limit_bytes=vmem_limit_bytes,
        ),
        cost_estimate=cost,
    )(xf, W1.astype(jnp.float32), b1c, W2.astype(jnp.float32), b2c)

    if HWp != HW:
        out = out[:, :, :HW]
    return out.reshape(B, C, H, Wd)


def channel_attention_ref(x, W1, b1, W2, b2):
    # pure-JAX reference matching the PyTorch forward exactly
    avg = jnp.mean(x, axis=(2, 3))                        # (B, C)
    mx = jnp.max(x, axis=(2, 3))                          # (B, C)

    def mlp(v):
        h = jnp.maximum(v @ W1.T + b1, 0.0)
        return h @ W2.T + b2

    att = mlp(avg) + mlp(mx)                              # (B, C)
    scale = jax.nn.sigmoid(att)[:, :, None, None]
    return x * scale


if __name__ == "__main__":
    # input_channels=64, reduction_ratio=16 -> hidden=4
    B, C, H, W = 2, 64, 16, 16
    r = 16
    hid = C // r

    key = jax.random.PRNGKey(0)
    kx, k1, k2, k3, k4 = jax.random.split(key, 5)

    x = jax.random.normal(kx, (B, C, H, W), dtype=jnp.float32)
    # Linear(in=C, out=hid): weight (out, in); Linear(in=hid, out=C): weight (out, in)
    W1 = jax.random.normal(k1, (hid, C), dtype=jnp.float32) * 0.1
    b1 = jax.random.normal(k2, (hid,), dtype=jnp.float32) * 0.1
    W2 = jax.random.normal(k3, (C, hid), dtype=jnp.float32) * 0.1
    b2 = jax.random.normal(k4, (C,), dtype=jnp.float32) * 0.1

    out = channel_attention(x, W1, b1, W2, b2)
    out = jax.block_until_ready(out)
    ref = channel_attention_ref(x, W1, b1, W2, b2)
    assert out.shape == x.shape
    assert jnp.allclose(out, ref, rtol=1e-5, atol=1e-5), "mismatch vs reference"

    # second shape exercising the padded / masked lane path (HW=100 -> padded to 128)
    x2 = jax.random.normal(kx, (B, C, 10, 10), dtype=jnp.float32)
    out2 = jax.block_until_ready(channel_attention(x2, W1, b1, W2, b2))
    ref2 = channel_attention_ref(x2, W1, b1, W2, b2)
    assert jnp.allclose(out2, ref2, rtol=1e-5, atol=1e-5), "mismatch vs reference (padded)"

    print("KERNEL_OK")
</pallas_src>

<mosaic_0001>
module attributes {stable_mosaic.version = 11 : i64} {
  func.func @_ca_kernel(%arg0: i32, %arg1: memref<1x64x256xf32, #tpu.memory_space<vmem>>, %arg2: memref<4x64xf32, #tpu.memory_space<vmem>>, %arg3: memref<4x1xf32, #tpu.memory_space<vmem>>, %arg4: memref<64x4xf32, #tpu.memory_space<vmem>>, %arg5: memref<64x1xf32, #tpu.memory_space<vmem>>, %arg6: memref<1x64x256xf32, #tpu.memory_space<vmem>>) attributes {dimension_semantics = [#tpu.dimension_semantics<parallel>], iteration_bounds = array<i64: 2>, scalar_prefetch = 0 : i64, scratch_operands = 0 : i64, tpu.core_type = #tpu.core_type<tc>, window_params = [{transform_indices = @transform_0, window_bounds = array<i64: 1, 64, 256>}, {pipeline_mode = #tpu.pipeline_mode<synchronous>, transform_indices = @transform_1, window_bounds = array<i64: 4, 64>}, {pipeline_mode = #tpu.pipeline_mode<synchronous>, transform_indices = @transform_2, window_bounds = array<i64: 4, 1>}, {pipeline_mode = #tpu.pipeline_mode<synchronous>, transform_indices = @transform_3, window_bounds = array<i64: 64, 4>}, {pipeline_mode = #tpu.pipeline_mode<synchronous>, transform_indices = @transform_4, window_bounds = array<i64: 64, 1>}, {transform_indices = @transform_5, window_bounds = array<i64: 1, 64, 256>}]} {
    %c0 = arith.constant 0 : index
    %c0_0 = arith.constant 0 : index
    %0 = vector.load %arg2[%c0, %c0_0] : memref<4x64xf32, #tpu.memory_space<vmem>>, vector<4x64xf32>
    %c0_1 = arith.constant 0 : index
    %c0_2 = arith.constant 0 : index
    %1 = vector.load %arg3[%c0_1, %c0_2] : memref<4x1xf32, #tpu.memory_space<vmem>>, vector<4x1xf32>
    %c0_3 = arith.constant 0 : index
    %c0_4 = arith.constant 0 : index
    %2 = vector.load %arg4[%c0_3, %c0_4] : memref<64x4xf32, #tpu.memory_space<vmem>>, vector<64x4xf32>
    %c0_5 = arith.constant 0 : index
    %c0_6 = arith.constant 0 : index
    %3 = vector.load %arg5[%c0_5, %c0_6] : memref<64x1xf32, #tpu.memory_space<vmem>>, vector<64x1xf32>
    %c0_7 = arith.constant 0 : index
    %c0_8 = arith.constant 0 : index
    %c0_9 = arith.constant 0 : index
    %4 = vector.load %arg1[%c0_7, %c0_8, %c0_9] : memref<1x64x256xf32, #tpu.memory_space<vmem>>, vector<1x64x256xf32>
    %5 = vector.shape_cast %4 : vector<1x64x256xf32> to vector<64x256xf32>
    %cst = arith.constant dense<0.000000e+00> : vector<64xf32>
    %6 = vector.multi_reduction <add>, %5, %cst [1] : vector<64x256xf32> to vector<64xf32>
    %7 = vector.shape_cast %6 : vector<64xf32> to vector<64x1xf32>
    %cst_10 = arith.constant 3.906250e-03 : f32
    %8 = vector.broadcast %cst_10 : f32 to vector<64x1xf32>
    %9 = arith.mulf %7, %8 : vector<64x1xf32>
    %cst_11 = arith.constant dense<0xFF800000> : vector<64xf32>
    %10 = vector.multi_reduction <maximumf>, %5, %cst_11 [1] : vector<64x256xf32> to vector<64xf32>
    %11 = vector.shape_cast %10 : vector<64xf32> to vector<64x1xf32>
    %12 = tpu.concatenate %9, %11 in 1 : vector<64x1xf32>, vector<64x1xf32> -> vector<64x2xf32>
    %cst_12 = arith.constant dense<0.000000e+00> : vector<4x2xf32>
    %13 = tpu.matmul %0, %12, %cst_12 {dimension_numbers = #tpu.dot_dimension_numbers<[1], [0], [0], [1], [0, 0, 1, 1], [], []>} : vector<4x64xf32>, vector<64x2xf32>, vector<4x2xf32> -> vector<4x2xf32>
    %14 = vector.broadcast %1 : vector<4x1xf32> to vector<4x2xf32>
    %15 = arith.addf %13, %14 : vector<4x2xf32>
    %cst_13 = arith.constant 0.000000e+00 : f32
    %16 = vector.broadcast %cst_13 : f32 to vector<4x2xf32>
    %17 = arith.maximumf %15, %16 : vector<4x2xf32>
    %cst_14 = arith.constant dense<0.000000e+00> : vector<64x2xf32>
    %18 = tpu.matmul %2, %17, %cst_14 {dimension_numbers = #tpu.dot_dimension_numbers<[1], [0], [0], [1], [0, 0, 1, 1], [], []>} : vector<64x4xf32>, vector<4x2xf32>, vector<64x2xf32> -> vector<64x2xf32>
    %19 = vector.broadcast %3 : vector<64x1xf32> to vector<64x2xf32>
    %20 = arith.addf %18, %19 : vector<64x2xf32>
    %21 = vector.extract_strided_slice %20 {offsets = [0, 0], sizes = [64, 1], strides = [1, 1]} : vector<64x2xf32> to vector<64x1xf32>
    %22 = vector.extract_strided_slice %20 {offsets = [0, 1], sizes = [64, 1], strides = [1, 1]} : vector<64x2xf32> to vector<64x1xf32>
    %23 = arith.addf %21, %22 : vector<64x1xf32>
    %24 = arith.negf %23 : vector<64x1xf32>
    %25 = math.exp %24 : vector<64x1xf32>
    %cst_15 = arith.constant 1.000000e+00 : f32
    %26 = vector.broadcast %cst_15 : f32 to vector<64x1xf32>
    %27 = arith.addf %26, %25 : vector<64x1xf32>
    %28 = arith.divf %26, %27 : vector<64x1xf32>
    %29 = vector.broadcast %28 : vector<64x1xf32> to vector<64x256xf32>
    %30 = arith.mulf %5, %29 : vector<64x256xf32>
    %c0_16 = arith.constant 0 : index
    %c0_17 = arith.constant 0 : index
    %c0_18 = arith.constant 0 : index
    %31 = vector.load %arg6[%c0_16, %c0_17, %c0_18] : memref<1x64x256xf32, #tpu.memory_space<vmem>>, vector<1x64x256xf32>
    %32 = vector.shape_cast %31 : vector<1x64x256xf32> to vector<64x256xf32>
    %33 = vector.shape_cast %30 : vector<64x256xf32> to vector<1x64x256xf32>
    tpu.vector_store %arg6[%c0_16, %c0_17, %c0_18], %33 {strides = array<i32>} : memref<1x64x256xf32, #tpu.memory_space<vmem>>, vector<1x64x256xf32>,
    return
  }
  func.func @transform_0(%arg0: i32) -> (i32, i32, i32) {
    %c0_i32 = arith.constant 0 : i32
    %c0_i32_0 = arith.constant 0 : i32
    %c0_i32_1 = arith.constant 0 : i32
    return %arg0, %c0_i32, %c0_i32_0 : i32, i32, i32
  }
  func.func @transform_1(%arg0: i32) -> (i32, i32) {
    %c0_i32 = arith.constant 0 : i32
    %c0_i32_0 = arith.constant 0 : i32
    %c0_i32_1 = arith.constant 0 : i32
    return %c0_i32, %c0_i32_0 : i32, i32
  }
  func.func @transform_2(%arg0: i32) -> (i32, i32) {
    %c0_i32 = arith.constant 0 : i32
    %c0_i32_0 = arith.constant 0 : i32
    %c0_i32_1 = arith.constant 0 : i32
    return %c0_i32, %c0_i32_0 : i32, i32
  }
  func.func @transform_3(%arg0: i32) -> (i32, i32) {
    %c0_i32 = arith.constant 0 : i32
    %c0_i32_0 = arith.constant 0 : i32
    %c0_i32_1 = arith.constant 0 : i32
    return %c0_i32, %c0_i32_0 : i32, i32
  }
  func.func @transform_4(%arg0: i32) -> (i32, i32) {
    %c0_i32 = arith.constant 0 : i32
    %c0_i32_0 = arith.constant 0 : i32
    %c0_i32_1 = arith.constant 0 : i32
    return %c0_i32, %c0_i32_0 : i32, i32
  }
  func.func @transform_5(%arg0: i32) -> (i32, i32, i32) {
    %c0_i32 = arith.constant 0 : i32
    %c0_i32_0 = arith.constant 0 : i32
    %c0_i32_1 = arith.constant 0 : i32
    return %arg0, %c0_i32, %c0_i32_0 : i32, i32, i32
  }
}

</mosaic_0001>

<bundles_post_ra>
// kernel: tpu_custom_call.1
= control target key start
LH: loop header
LB: loop body
LE: loop exit
PB: predicated region body
PF: predicated region fallthrough
CT: control target
= control target key end

     0   :  { %10 = vsyncpa [#allocation3], 0  ;;  %s1504_s0 = inlined_call_operand.hbm [shape: f32[2,64,256], index: 0, kind: input, shape index: {}]   ;;  %s1505_s1 = inlined_call_operand.vmem [shape: f32[4,64], index: 1, kind: input, shape index: {}]   ;;  %s1506_s2 = inlined_call_operand.vmem [shape: f32[4,1], index: 2, kind: input, shape index: {}]   ;;  %s1507_s3 = inlined_call_operand.vmem [shape: f32[64,4], index: 3, kind: input, shape index: {}]   ;;  %s1508_s4 = inlined_call_operand.vmem [shape: f32[64,1], index: 4, kind: input, shape index: {}]   ;;  %s1509_s5 = inlined_call_operand.hbm [shape: f32[2,64,256], index: 5, kind: output, shape index: {}]  }
   0x1   :  { %12 = vsyncpa [#allocation3 + $0x1], 0 }
   0x2   :  { %13 = vsyncpa [#allocation4], 0 }
   0x3   :  { %15 = vsyncpa [#allocation4 + $0x1], 0  ;;  %s1150_s18 = smov 0   ;;  %s1152_s19 = smov 0  }
   0x4   :  { %s1154_s20 = smov 0   ;;  %s1156_s21 = smov 0  }
   0x5 LB: > { %s1171_s22 = sadd.s32 4294967295, %s1108_s21   ;;  %s843_s23 = sadd.s32 4294967294, %s1108_s21   ;;  %s1108_s21 = sphi %s1156_s21, %s1524_s21   ;;  %s1104_s20 = sphi %s1154_s20, %s1523_s20   ;;  %s1100_s19 = sphi %s1152_s19, %s1522_s19   ;;  %s1096_s18 = sphi %s1150_s18, %s1521_s18  }
   0x6   : > { %s1175_s24 = sadd.s32 1, %s1108_s21   ;;  %s28_s25 = sadd.s32 1, %s1104_s20 }
   0x7   : > { %s25_s26 = ssub.s32 %s1108_s21, %s1175_s24  ;;  %p35_p0 = scmp.ne.s32.totalorder %s1104_s20, %s1100_s19 }
   0x8   : > { %p26_p1 = scmp.eq.s32.totalorder %s25_s26, 0  ;;  %p36_p2 = scmp.eq.s32.totalorder %s1108_s21, 0 }
   0x9   : > { %p41_p3 = scmp.ne.s32.totalorder %s1100_s19, %s1096_s18  ;;  %p42_p4 = scmp.eq.s32.totalorder %s1171_s22, 0 }
   0xa   : > { %s1187_s27 = scalar_select %p26_p1, %s1104_s20, %s28_s25  }
   0xb   : > { %p1189_p5 = por %p36_p2, %p35_p0  ;;  %p1193_p6 = por %p42_p4, %p41_p3 }
   0xc   : > { %p149_p7 = scmp.eq.s32.totalorder %s1171_s22, 1  ;;  %p155_p8 = scmp.eq.s32.totalorder %s843_s23, 1 }
   0xd   : > { %s1513_s29 = scalar_select %p1193_p6, 1, 0 }
   0xe   : > { %p940_p10 = scmp.lt.s32.totalorder %s1108_s21, 2  ;;  %p1200_p11 = por %p149_p7, %p35_p0 }
   0xf   : > { %p1204_p12 = por %p155_p8, %p41_p3  ;;  %s187_s7 = sand.u32 1, %s1104_s20  }
  0x10   : > { %s1514_s30 = scalar_select %p1200_p11, 1, 0 }
  0x11   : > { %s1515_s6 = scalar_select %p1204_p12, 1, 0 }
  0x12   : > { %s875_s8 = sshll.u32 %s1108_s21, 11  ;;  %s846_s9 = sshll.u32 %s187_s7, 7 }
  0x13   : > { %s1213_s12 = scalar_lea.hbm %s1504_s0, %s875_s8  ;;  %s191_s13 = scalar_lea.vmem [#allocation2], %s846_s9 }
  0x14   : > { %s198_s14 = sshll.u32 %s191_s13, 4  ;;  %p1217_p13 = pnand %p940_p10, %p1189_p5  ;;  %s1221_s14 = int_to_ptr.vmem [resolvable:$true] %s198_s14 }
  0x15   : > { %s1223_s16 = scalar_lea.sflag [#allocation3], %s187_s7  ;;  %s1016_s17 = scalar_lea.hbm %s1213_s12, 2048 }
  0x16   : > { %p1017_p0 = scmp.ne.s32.totalorder %s1213_s12, %s1016_s17  ;;  %p1018_p1 = pneg %p1217_p13 }
  0x17   : > { %s1021_s26 = scalar_lea.hbm %s1504_s0, 4096  ;;  %p1022_p4 = scmp.lt.s32.totalorder %s1213_s12, %s1504_s0 }
  0x18   : > { %p1019_p2 = pnand %p1018_p1, %p1017_p0  ;;  %p1023_p5 = scmp.lt.s32.totalorder %s1021_s26, %s1016_s17 }
  0x1a   : > { %p1020_p3 = pneg %p1019_p2  ;;  %p1024_p7 = por %p1023_p5, %p1022_p4 }
  0x1c   : > { %p1025_p8 = pnand %p1024_p7, %p1020_p3 }
  0x1e   : > { %1028 = shalt.err (!%p1025_p8)
}
  0x1f   : > { %s1029_s7 = scalar_lea.vmem %s1221_s14, 2048  ;;  %s1110_s9 = smov [#allocation2]  }
  0x20   : > { %p1030_p10 = scmp.ne.s32.totalorder %s1221_s14, %s1029_s7  ;;  %s1034_s10 = sshll.u32 %s1110_s9, 4  ;;  %s1035_s10 = int_to_ptr.vmem [resolvable:$false] %s1034_s10 }
  0x21   : > { %s1036_s11 = scalar_lea.vmem %s1035_s10, 4096  ;;  %p1037_p2 = scmp.lt.s32.totalorder %s1221_s14, %s1035_s10 }
  0x22   : > { %p1032_p9 = pnand %p1030_p10, %p1018_p1  ;;  %p1038_p12 = scmp.lt.s32.totalorder %s1036_s11, %s1029_s7 }
  0x24   : > { %p1033_p0 = pneg %p1032_p9  ;;  %p1039_p11 = por %p1038_p12, %p1037_p2 }
  0x26   : > { %p1040_p6 = pnand %p1039_p11, %p1033_p0 }
  0x28   : > { %1043 = shalt.err (!%p1040_p6)
}
  0x29   : > { %s1111_s13 = smov 256   ;;  %s1112_s17 = smov 16  }
  0x2a   : > { %935 = dma.hbm_to_vmem [thread:$0]  (!%p1217_p13), %s1213_s12, 2048, %s1221_s14, %s1223_s16, %s1111_s13, %s1111_s13, %s1112_s17  }
  0x2b   : > { %p849_p9 = scmp.ge.s32.totalorder %s1108_s21, 1  ;;  %p206_p1 = scmp.lt.s32.totalorder %s1108_s21, 3 }
  0x2d   : > { %p207_p3 = pnand %p849_p9, %p206_p1 }
  0x2e   : > { %s1247_s23 = sand.u32 (!%p207_p3), 1, %s1100_s19   ;;  %p1517_p6 = scmp.ne.s32.totalorder (!%p207_p3), %s1513_s29, 0 }
  0x2f   : > { %210 = sbr.rel (%p207_p3) target bundleno = 923 (0x39b), region = 40  ;;  %s850_s25 = sshll.u32 (!%p207_p3), %s1247_s23, 7 }
  0x30   : > { %s213_s26 = scalar_lea.sflag (!%p207_p3), [#allocation3], %s1247_s23  ;;  %s1253_s28 = scalar_lea.vmem (!%p207_p3), [#allocation2], %s850_s25 }
  0x34   : > { %1087 = dma.done.wait (%p1517_p6), %s213_s26, 2048  }
  0x35   : > { %1089 = vsyncadd (%p1517_p6), %s213_s26, 4294965248  ;;  %v1260_v0 = vld [vmem:[%s1253_s28 + $0x70] sm:$0xff]  ;;  %v1263_v1 = vld [vmem:[%s1253_s28 + $0x78] sm:$0xff]  ;;  %v1113_v20 = vmov 0.0   ;;  %vm1114_vm0 = vmmov 0   ;;  %v1115_v33 = vmov 0  }
  0x36   : > { %v1266_v2 = vld [vmem:[%s1253_s28 + $0x60] sm:$0xff]  ;;  %v330_v3 = vmax.f32 %v1260_v0, %v1263_v1  ;;  %v298_v4 = vadd.f32 %v1263_v1, %v1260_v0  ;;  %v1273_v5 = vld [vmem:[%s1253_s28 + $0x68] sm:$0xff]  ;;  %v1276_v6 = vld [vmem:[%s1253_s28 + $0x50] sm:$0xff]  ;;  %895 = vmatprep.subr.mxu0 %v1113_v20  ;;  %911 = vmatprep.mubr.msk.f32.mxu0 %vm1114_vm0, %v1113_v20  ;;  %vm333_vm1 = vcmask 7168   ;;  %vm347_vm2 = vcmask 523264   ;;  %s1116_s10 = smov 127  }
  0x37   : > { %v1279_v7 = vld [vmem:[%s1253_s28 + $0x58] sm:$0xff]  ;;  %v295_v8 = vadd.f32 %v1273_v5, %v1266_v2  ;;  %v1286_v10 = vld [vmem:[%s1253_s28 + $0x40] sm:$0xff]  ;;  %v1289_v11 = vld [vmem:[%s1253_s28 + $0x48] sm:$0xff]  ;;  %v327_v12 = vmax.f32 %v1266_v2, %v1273_v5  ;;  %982 = vset.pattern.permute.xlu0 %v1115_v33  ;;  %983 = vset.pattern.permute.xlu1 %v1115_v33  ;;  %vm462_vm3 = vcmask 31744   ;;  %vm487_vm4 = vcmask 1043456   ;;  %s1422_s11 = scalar_lea.vmem [#allocation5], %s850_s25 }
  0x38   : > { %331 = vmax.xlane.f32.xlu1 %v330_v3  ;;  %299 = vadd.xlane.f32.xlu0 %v298_v4  ;;  %v292_v9 = vadd.f32 %v1279_v7, %v1276_v6  ;;  %v289_v13 = vadd.f32 %v1289_v11, %v1286_v10  ;;  %v1296_v14 = vld [vmem:[%s1253_s28 + $0x30] sm:$0xff]  ;;  %v1299_v15 = vld [vmem:[%s1253_s28 + $0x38] sm:$0xff]  ;;  %v324_v16 = vmax.f32 %v1276_v6, %v1279_v7  ;;  %v1306_v18 = vld [vmem:[%s1253_s28 + $0x20] sm:$0xff]  ;;  %s876_s25 = sshll.u32 %s1171_s22, 11  ;;  %s770_s13 = sshll.u32 %s1422_s11, 4  ;;  %s1455_s13 = int_to_ptr.vmem [resolvable:$true] %s770_s13 }
  0x39   : > { %v286_v17 = vadd.f32 %v1299_v15, %v1296_v14  ;;  %v1309_v19 = vld [vmem:[%s1253_s28 + $0x28] sm:$0xff]  ;;  %v321_v21 = vmax.f32 %v1286_v10, %v1289_v11  ;;  %v1317_v23 = vld [vmem:[%s1253_s28 + $0x10] sm:$0xff]  ;;  %v1320_v24 = vld [vmem:[%s1253_s28 + $0x18] sm:$0xff]  ;;  %v318_v25 = vmax.f32 %v1296_v14, %v1299_v15  ;;  %s757_s22 = scalar_lea.sflag [#allocation4], %s1247_s23  ;;  %s1044_s29 = scalar_lea.vmem %s1455_s13, 2048 }
  0x3a   : > { %v283_v22 = vadd.f32 %v1309_v19, %v1306_v18  ;;  %v280_v26 = vadd.f32 %v1320_v24, %v1317_v23  ;;  %v1327_v27 = vld [vmem:[%s1253_s28] sm:$0xff]  ;;  %v1330_v28 = vld [vmem:[%s1253_s28 + $0x8] sm:$0xff]  ;;  %v315_v29 = vmax.f32 %v1306_v18, %v1309_v19  ;;  %v312_v31 = vmax.f32 %v1317_v23, %v1320_v24  ;;  %s1453_s28 = scalar_lea.hbm %s1509_s5, %s876_s25  ;;  %p1045_p11 = scmp.ne.s32.totalorder %s1455_s13, %s1044_s29 }
  0x3b   : > { %v277_v30 = vadd.f32 %v1330_v28, %v1327_v27  ;;  %v309_v32 = vmax.f32 %v1327_v27, %v1330_v28  ;;  %v244_v34 = vld [vmem:[%s1506_s2] sm:$0xf]  ;;  %p1518_p12 = scmp.ne.s32.totalorder %s1514_s30, 0  ;;  %s1117_s12 = smov [#allocation5]  }
  0x3c   : > { %296 = vadd.xlane.f32.xlu0 %v295_v8  ;;  %293 = vadd.xlane.f32.xlu1 %v292_v9  ;;  %v243_v8 = vld [vmem:[%s1505_s1] sm:$0xf]  ;;  %s1048_s14 = sshll.u32 %s1117_s12, 4  ;;  %s1049_s14 = int_to_ptr.vmem [resolvable:$false] %s1048_s14 }
  0x3d   : > { %p1046_p13 = pnand %p1045_p11, %p1518_p12  ;;  %s1050_s15 = scalar_lea.vmem %s1049_s14, 4096 }
  0x3e   : > { %p1051_p5 = scmp.lt.s32.totalorder %s1455_s13, %s1049_s14  ;;  %p1052_p7 = scmp.lt.s32.totalorder %s1050_s15, %s1044_s29 }
  0x3f   : > { %p1047_p4 = pneg %p1046_p13 }
  0x40   : > { %328 = vmax.xlane.f32.xlu0 %v327_v12  ;;  %290 = vadd.xlane.f32.xlu1 %v289_v13  ;;  %v245_v12 = vld [vmem:[%s1507_s3] sm:$0xff]  ;;  %p1053_p8 = por %p1052_p7, %p1051_p5 }
  0x41   : > { %916 = vmatprep.mubr.msk.f32.mxu1 %vm462_vm3, %v245_v12  ;;  %v253_v13 = vld [vmem:[%s1508_s4] sm:$0xff] }
  0x42   : > { %p1054_p10 = pnand %p1053_p8, %p1047_p4 }
  0x44   : > { %325 = vmax.xlane.f32.xlu0 %v324_v16  ;;  %287 = vadd.xlane.f32.xlu1 %v286_v17  ;;  %v254_v16 = vld [vmem:[%s1508_s4 + $0x8] sm:$0xff]  ;;  %v255_v17 = vld [vmem:[%s1508_s4 + $0x10] sm:$0xff] }
  0x48   : > { %322 = vmax.xlane.f32.xlu0 %v321_v21  ;;  %284 = vadd.xlane.f32.xlu1 %v283_v22  ;;  %v257_v21 = vld [vmem:[%s1508_s4 + $0x20] sm:$0xff]  ;;  %v258_v22 = vld [vmem:[%s1508_s4 + $0x28] sm:$0xff] }
  0x4c   : > { %319 = vmax.xlane.f32.xlu0 %v318_v25  ;;  %281 = vadd.xlane.f32.xlu1 %v280_v26  ;;  %v259_v25 = vld [vmem:[%s1508_s4 + $0x30] sm:$0xff]  ;;  %v260_v26 = vld [vmem:[%s1508_s4 + $0x38] sm:$0xff] }
  0x50   : > { %316 = vmax.xlane.f32.xlu0 %v315_v29  ;;  %278 = vadd.xlane.f32.xlu1 %v277_v30 }
  0x54   : > { %313 = vmax.xlane.f32.xlu0 %v312_v31  ;;  %310 = vmax.xlane.f32.xlu1 %v309_v32 }
  0x65   : > { %424 = vperm.xlu1 %983, %v253_v13  }
  0x69   : > { %429 = vperm.xlu1 %983, %v254_v16  }
  0x6a   : > { %344 = vperm.xlu0 %982, %v244_v34   ;;  %v246_v34 = vld [vmem:[%s1507_s3 + $0x8] sm:$0xff] }
  0x6d   : > { %434 = vperm.xlu1 %983, %v255_v17  }
  0xc1   : > { %v332_v35 = vpop.xlane.xlu1 %331  ;;  %v300_v36 = vpop.xlane.xlu0 %299 }
  0xc2   : > { %v308_v37 = vmul.f32 0.00390625, %v300_v36  ;;  %v248_v36 = vld [vmem:[%s1507_s3 + $0x18] sm:$0xff] }
  0xc4   : > { %v341_v38 = vsel %vm333_vm1, %v308_v37, %v332_v35  ;;  %v247_v35 = vld [vmem:[%s1507_s3 + $0x10] sm:$0xff]  ;;  %v249_v37 = vld [vmem:[%s1507_s3 + $0x20] sm:$0xff] }
  0xc5   : > { %896 = vmatpush3.msra.mxu0 %v341_v38  ;;  %v297_v39 = vpop.xlane.xlu0 %296  ;;  %v294_v40 = vpop.xlane.xlu1 %293  ;;  %v250_v38 = vld [vmem:[%s1507_s3 + $0x28] sm:$0xff] }
  0xc6   : > { %897 = vmatprep.subr.mxu0 %v1113_v20  ;;  %v307_v41 = vmul.f32 0.00390625, %v297_v39  ;;  %v306_v45 = vmul.f32 0.00390625, %v294_v40  ;;  %v251_v39 = vld [vmem:[%s1507_s3 + $0x30] sm:$0xff]  ;;  %v252_v40 = vld [vmem:[%s1507_s3 + $0x38] sm:$0xff] }
  0xc9   : > { %v329_v42 = vpop.xlane.xlu0 %328  ;;  %v291_v43 = vpop.xlane.xlu1 %290 }
  0xca   : > { %v340_v44 = vsel %vm333_vm1, %v307_v41, %v329_v42  ;;  %v305_v49 = vmul.f32 0.00390625, %v291_v43 }
  0xcb   : > { %898 = vmatpush3.msra.mxu0 %v340_v44 }
  0xcc   : > { %899 = vmatprep.subr.mxu0 %v1113_v20 }
  0xcd   : > { %v326_v46 = vpop.xlane.xlu0 %325  ;;  %v288_v47 = vpop.xlane.xlu1 %287 }
  0xce   : > { %v339_v48 = vsel %vm333_vm1, %v306_v45, %v326_v46  ;;  %v304_v53 = vmul.f32 0.00390625, %v288_v47 }
  0xcf   : > { %900 = vmatpush3.msra.mxu0 %v339_v48 }
  0xd0   : > { %901 = vmatprep.subr.mxu0 %v1113_v20 }
  0xd1   : > { %v323_v50 = vpop.xlane.xlu0 %322  ;;  %v285_v51 = vpop.xlane.xlu1 %284 }
  0xd2   : > { %v338_v52 = vsel %vm333_vm1, %v305_v49, %v323_v50  ;;  %v303_v57 = vmul.f32 0.00390625, %v285_v51 }
  0xd3   : > { %902 = vmatpush3.msra.mxu0 %v338_v52 }
  0xd4   : > { %903 = vmatprep.subr.mxu0 %v1113_v20 }
  0xd5   : > { %v320_v54 = vpop.xlane.xlu0 %319  ;;  %v282_v55 = vpop.xlane.xlu1 %281 }
  0xd6   : > { %v337_v56 = vsel %vm333_vm1, %v304_v53, %v320_v54  ;;  %v302_v61 = vmul.f32 0.00390625, %v282_v55 }
  0xd7   : > { %904 = vmatpush3.msra.mxu0 %v337_v56 }
  0xd8   : > { %905 = vmatprep.subr.mxu0 %v1113_v20 }
  0xd9   : > { %v317_v58 = vpop.xlane.xlu0 %316  ;;  %v279_v59 = vpop.xlane.xlu1 %278 }
  0xda   : > { %v336_v60 = vsel %vm333_vm1, %v303_v57, %v317_v58  ;;  %v301_v62 = vmul.f32 0.00390625, %v279_v59 }
  0xdb   : > { %906 = vmatpush3.msra.mxu0 %v336_v60 }
  0xdc   : > { %907 = vmatprep.subr.mxu0 %v1113_v20 }
  0xdd   : > { %v314_v63 = vpop.xlane.xlu0 %313  ;;  %v311_v3 = vpop.xlane.xlu1 %310 }
  0xde   : > { %v335_v4 = vsel %vm333_vm1, %v302_v61, %v314_v63  ;;  %v334_v9 = vsel %vm333_vm1, %v301_v62, %v311_v3 }
  0xdf   : > { %908 = vmatpush3.msra.mxu0 %v335_v4 }
  0xe0   : > { %909 = vmatprep.subr.mxu0 %v1113_v20  ;;  %v256_v20 = vld [vmem:[%s1508_s4 + $0x18] sm:$0xff] }
  0xe1   : > { %910 = vmatpush3.msra.mxu0 %v334_v9  ;;  %439 = vperm.xlu1 %983, %v256_v20   ;;  %v425_v41 = vpop.permute.xlu1 %424 }
  0xe2   : > { %912 = vmatmul.mubr.msk.f32.vlgmr.msra.gmra.mxu0 %vm347_vm2, %v243_v8 }
  0xe5   : > { %444 = vperm.xlu1 %983, %v257_v21   ;;  %v345_v29 = vpop.permute.xlu0 %344  ;;  %v430_v42 = vpop.permute.xlu1 %429 }
  0xe9   : > { %449 = vperm.xlu1 %983, %v258_v22   ;;  %v435_v43 = vpop.permute.xlu1 %434 }
  0xed   : > { %454 = vperm.xlu1 %983, %v259_v25  }
  0xf1   : > { %459 = vperm.xlu1 %983, %v260_v26  }
 0x15c   : > { %v440_v44 = vpop.permute.xlu1 %439 }
 0x160   : > { %v445_v45 = vpop.permute.xlu1 %444 }
 0x164   : > { %v450_v46 = vpop.permute.xlu1 %449 }
 0x168   : > { %v455_v53 = vpop.permute.xlu1 %454 }
 0x16c   : > { %v460_v60 = vpop.permute.xlu1 %459 }
 0x1a2   : > { %v417_v30 = vpop.f32.mrf.mxu0 }
 0x1a3   : > { %v418_v31 = vadd.f32 %v417_v30, %v345_v29 }
 0x1a4   : > { %v913_v32 = vpop.f32.mrf.mxu0 }
 0x1a5   : > { %v421_v33 = vmax.f32 %v418_v31, 0.0 }
 0x1a7   : > { %914 = vmatprep.subr.msk.mxu1 %vm487_vm4, %v421_v33 }
 0x1a8   : > { %915 = vmatpush3.msk.msra.mxu1 %vm487_vm4, %v421_v33 }
 0x1a9   : > { %917 = vmatmul.mubr.msk.f32.vlgmr.msra.gmra.mxu1 %vm462_vm3, %v246_v34 }
 0x1aa   : > { %919 = vmatprep.mubr.msk.f32.mxu1 %vm462_vm3, %v247_v35 }
 0x1ad   : > { %920 = vmatmul.mubr.msk.f32.gmra.mxu1 %vm462_vm3, %v248_v36 }
 0x1ae   : > { %922 = vmatprep.mubr.msk.f32.mxu1 %vm462_vm3, %v249_v37 }
 0x1b1   : > { %923 = vmatmul.mubr.msk.f32.gmra.mxu1 %vm462_vm3, %v250_v38 }
 0x1b2   : > { %925 = vmatprep.mubr.msk.f32.mxu1 %vm462_vm3, %v251_v39 }
 0x1b5   : > { %926 = vmatmul.mubr.msk.f32.gmra.mxu1 %vm462_vm3, %v252_v40 }
 0x269   : > { %v918_v47 = vpop.f32.mrf.mxu1 }
 0x26a   : > { %v563_v48 = vadd.f32 %v918_v47, %v430_v42 }
 0x26b   : > { %v557_v49 = vpop.f32.mrf.mxu1 }
 0x26c   : > { %v558_v50 = vadd.f32 %v557_v49, %v425_v41  ;;  %606 = vrot.lane.b32.xlu1 %v563_v48, %s1116_s10 }
 0x26d   : > { %v921_v51 = vpop.f32.mrf.mxu1 }
 0x26e   : > { %v573_v52 = vadd.f32 %v921_v51, %v440_v44  ;;  %604 = vrot.lane.b32.xlu0 %v558_v50, %s1116_s10 }
 0x26f   : > { %v567_v54 = vpop.f32.mrf.mxu1 }
 0x270   : > { %v568_v55 = vadd.f32 %v567_v54, %v435_v43  ;;  %610 = vrot.lane.b32.xlu1 %v573_v52, %s1116_s10 }
 0x271   : > { %v924_v56 = vpop.f32.mrf.mxu1 }
 0x272   : > { %v583_v57 = vadd.f32 %v924_v56, %v450_v46  ;;  %608 = vrot.lane.b32.xlu0 %v568_v55, %s1116_s10 }
 0x273   : > { %v577_v58 = vpop.f32.mrf.mxu1 }
 0x274   : > { %v578_v59 = vadd.f32 %v577_v58, %v445_v45  ;;  %614 = vrot.lane.b32.xlu1 %v583_v57, %s1116_s10 }
 0x275   : > { %v927_v61 = vpop.f32.mrf.mxu1 }
 0x276   : > { %v593_v62 = vadd.f32 %v927_v61, %v460_v60  ;;  %612 = vrot.lane.b32.xlu0 %v578_v59, %s1116_s10 }
 0x277   : > { %v587_v63 = vpop.f32.mrf.mxu1 }
 0x278   : > { %v588_v3 = vadd.f32 %v587_v63, %v455_v53  ;;  %618 = vrot.lane.b32.xlu1 %v593_v62, %s1116_s10 }
 0x27a   : > { %616 = vrot.lane.b32.xlu0 %v588_v3, %s1116_s10 }
 0x2de   : > { %v607_v4 = vpop.permute.xlu1 %606 }
 0x2df   : > { %v629_v8 = vadd.f32 %v607_v4, %v563_v48 }
 0x2e0   : > { %v605_v9 = vpop.permute.xlu0 %604 }
 0x2e1   : > { %v863_v12 = vmul.f32 -1.442695, %v629_v8  ;;  %v628_v13 = vadd.f32 %v605_v9, %v558_v50 }
 0x2e2   : > { %v611_v16 = vpop.permute.xlu1 %610 }
 0x2e3   : > { %984 = vpow2.f32 %v863_v12  ;;  %v862_v17 = vmul.f32 -1.442695, %v628_v13  ;;  %v631_v20 = vadd.f32 %v611_v16, %v573_v52 }
 0x2e4   : > { %v609_v21 = vpop.permute.xlu0 %608 }
 0x2e5   : > { %986 = vpow2.f32 %v862_v17  ;;  %v865_v22 = vmul.f32 -1.442695, %v631_v20  ;;  %v630_v25 = vadd.f32 %v609_v21, %v568_v55 }
 0x2e6   : > { %v615_v26 = vpop.permute.xlu1 %614 }
 0x2e7   : > { %988 = vpow2.f32 %v865_v22  ;;  %v864_v29 = vmul.f32 -1.442695, %v630_v25  ;;  %v633_v30 = vadd.f32 %v615_v26, %v583_v57 }
 0x2e8   : > { %v613_v31 = vpop.permute.xlu0 %612 }
 0x2e9   : > { %990 = vpow2.f32 %v864_v29  ;;  %v867_v32 = vmul.f32 -1.442695, %v633_v30  ;;  %v632_v33 = vadd.f32 %v613_v31, %v578_v59 }
 0x2ea   : > { %v619_v34 = vpop.permute.xlu1 %618 }
 0x2eb   : > { %992 = vpow2.f32 %v867_v32  ;;  %v866_v35 = vmul.f32 -1.442695, %v632_v33  ;;  %v635_v36 = vadd.f32 %v619_v34, %v593_v62 }
 0x2ec   : > { %v617_v37 = vpop.permute.xlu0 %616 }
 0x2ed   : > { %994 = vpow2.f32 %v866_v35  ;;  %v869_v38 = vmul.f32 -1.442695, %v635_v36  ;;  %v634_v39 = vadd.f32 %v617_v37, %v588_v3 }
 0x2ef   : > { %996 = vpow2.f32 %v869_v38  ;;  %v868_v40 = vmul.f32 -1.442695, %v634_v39 }
 0x2f0   : > { %v985_v41 = vpop.eup %984 }
 0x2f1   : > { %v661_v42 = vadd.f32 1.0, %v985_v41  ;;  %998 = vpow2.f32 %v868_v40 }
 0x2f2   : > { %v987_v43 = vpop.eup %986 }
 0x2f3   : > { %1000 = vrcp.f32 %v661_v42  ;;  %v660_v44 = vadd.f32 1.0, %v987_v43 }
 0x2f4   : > { %v989_v45 = vpop.eup %988 }
 0x2f5   : > { %1002 = vrcp.f32 %v660_v44  ;;  %v663_v46 = vadd.f32 1.0, %v989_v45 }
 0x2f6   : > { %v991_v47 = vpop.eup %990 }
 0x2f7   : > { %1004 = vrcp.f32 %v663_v46  ;;  %v662_v48 = vadd.f32 1.0, %v991_v47 }
 0x2f8   : > { %v993_v49 = vpop.eup %992 }
 0x2f9   : > { %1006 = vrcp.f32 %v662_v48  ;;  %v665_v50 = vadd.f32 1.0, %v993_v49 }
 0x2fa   : > { %v995_v51 = vpop.eup %994 }
 0x2fb   : > { %1008 = vrcp.f32 %v665_v50  ;;  %v664_v52 = vadd.f32 1.0, %v995_v51 }
 0x2fc   : > { %v997_v53 = vpop.eup %996 }
 0x2fd   : > { %1010 = vrcp.f32 %v664_v52  ;;  %v667_v54 = vadd.f32 1.0, %v997_v53 }
 0x2fe   : > { %v999_v55 = vpop.eup %998 }
 0x2ff   : > { %1012 = vrcp.f32 %v667_v54  ;;  %v666_v56 = vadd.f32 1.0, %v999_v55 }
 0x300   : > { %v1001_v57 = vpop.eup %1000 }
 0x301   : > { %1014 = vrcp.f32 %v666_v56  ;;  %691 = vperm.xlu1 %983, %v1001_v57  }
 0x302   : > { %v1003_v58 = vpop.eup %1002 }
 0x303   : > { %686 = vperm.xlu0 %982, %v1003_v58  }
 0x304   : > { %v1005_v59 = vpop.eup %1004 }
 0x305   : > { %701 = vperm.xlu1 %983, %v1005_v59  }
 0x306   : > { %v1007_v60 = vpop.eup %1006 }
 0x307   : > { %696 = vperm.xlu0 %982, %v1007_v60  }
 0x308   : > { %v1009_v61 = vpop.eup %1008 }
 0x309   : > { %711 = vperm.xlu1 %983, %v1009_v61  }
 0x30a   : > { %v1011_v62 = vpop.eup %1010 }
 0x30b   : > { %706 = vperm.xlu0 %982, %v1011_v62  }
 0x30c   : > { %v1013_v63 = vpop.eup %1012 }
 0x30d   : > { %721 = vperm.xlu1 %983, %v1013_v63  }
 0x30e   : > { %v1015_v3 = vpop.eup %1014 }
 0x30f   : > { %716 = vperm.xlu0 %982, %v1015_v3  }
 0x37c   : > { %v692_v4 = vpop.permute.xlu1 %691 }
 0x37d   : > { %v726_v8 = vmul.f32 %v692_v4, %v1317_v23  ;;  %v727_v9 = vmul.f32 %v692_v4, %v1320_v24 }
 0x37e   : > { %v687_v12 = vpop.permute.xlu0 %686 }
 0x37f   : > { %742 = vst [vmem:[%s1422_s11 + $0x10] sm:$0xff] %v726_v8  ;;  %743 = vst [vmem:[%s1422_s11 + $0x18] sm:$0xff] %v727_v9  ;;  %v724_v13 = vmul.f32 %v687_v12, %v1327_v27  ;;  %v725_v23 = vmul.f32 %v687_v12, %v1330_v28 }
 0x380   : > { %v702_v16 = vpop.permute.xlu1 %701 }
 0x381   : > { %740 = vst [vmem:[%s1422_s11] sm:$0xff] %v724_v13  ;;  %741 = vst [vmem:[%s1422_s11 + $0x8] sm:$0xff] %v725_v23  ;;  %v730_v24 = vmul.f32 %v702_v16, %v1296_v14  ;;  %v731_v17 = vmul.f32 %v702_v16, %v1299_v15 }
 0x382   : > { %v697_v20 = vpop.permute.xlu0 %696 }
 0x383   : > { %746 = vst [vmem:[%s1422_s11 + $0x30] sm:$0xff] %v730_v24  ;;  %747 = vst [vmem:[%s1422_s11 + $0x38] sm:$0xff] %v731_v17  ;;  %v728_v21 = vmul.f32 %v697_v20, %v1306_v18  ;;  %v729_v27 = vmul.f32 %v697_v20, %v1309_v19 }
 0x384   : > { %v712_v28 = vpop.permute.xlu1 %711 }
 0x385   : > { %744 = vst [vmem:[%s1422_s11 + $0x20] sm:$0xff] %v728_v21  ;;  %745 = vst [vmem:[%s1422_s11 + $0x28] sm:$0xff] %v729_v27  ;;  %v734_v22 = vmul.f32 %v712_v28, %v1276_v6  ;;  %v735_v14 = vmul.f32 %v712_v28, %v1279_v7 }
 0x386   : > { %v707_v15 = vpop.permute.xlu0 %706 }
 0x387   : > { %750 = vst [vmem:[%s1422_s11 + $0x50] sm:$0xff] %v734_v22  ;;  %751 = vst [vmem:[%s1422_s11 + $0x58] sm:$0xff] %v735_v14  ;;  %v732_v25 = vmul.f32 %v707_v15, %v1286_v10  ;;  %v733_v18 = vmul.f32 %v707_v15, %v1289_v11 }
 0x388   : > { %v722_v19 = vpop.permute.xlu1 %721 }
 0x389   : > { %748 = vst [vmem:[%s1422_s11 + $0x40] sm:$0xff] %v732_v25  ;;  %749 = vst [vmem:[%s1422_s11 + $0x48] sm:$0xff] %v733_v18  ;;  %v738_v6 = vmul.f32 %v722_v19, %v1260_v0  ;;  %v739_v7 = vmul.f32 %v722_v19, %v1263_v1 }
 0x38a   : > { %v717_v26 = vpop.permute.xlu0 %716 }
 0x38b   : > { %754 = vst [vmem:[%s1422_s11 + $0x70] sm:$0xff] %v738_v6  ;;  %755 = vst [vmem:[%s1422_s11 + $0x78] sm:$0xff] %v739_v7  ;;  %v736_v10 = vmul.f32 %v717_v26, %v1266_v2  ;;  %v737_v11 = vmul.f32 %v717_v26, %v1273_v5 }
 0x38d   : > { %752 = vst [vmem:[%s1422_s11 + $0x60] sm:$0xff] %v736_v10  ;;  %753 = vst [vmem:[%s1422_s11 + $0x68] sm:$0xff] %v737_v11 }
 0x38e   : > { %1057 = shalt.err (!%p1054_p10)
}
 0x38f   : > { %s1058_s16 = scalar_lea.hbm %s1453_s28, 2048  ;;  %s1062_s9 = scalar_lea.hbm %s1509_s5, 4096 }
 0x390   : > { %p1059_p0 = scmp.ne.s32.totalorder %s1453_s28, %s1058_s16  ;;  %p1063_p1 = scmp.lt.s32.totalorder %s1453_s28, %s1509_s5 }
 0x391   : > { %p1064_p3 = scmp.lt.s32.totalorder %s1062_s9, %s1058_s16 }
 0x392   : > { %p1060_p2 = pnand %p1059_p0, %p1518_p12 }
 0x393   : > { %p1065_p6 = por %p1064_p3, %p1063_p1 }
 0x394   : > { %p1061_p9 = pneg %p1060_p2 }
 0x396   : > { %p1066_p11 = pnand %p1065_p6, %p1061_p9 }
 0x398   : > { %1069 = shalt.err (!%p1066_p11)
}
 0x399   : > { %s1118_s25 = smov 256   ;;  %s1119_s17 = smov 16  }
 0x39a   : > { %930 = dma.vmem_to_hbm [thread:$0]  (%p1518_p12), %s1455_s13, 2048, %s1453_s28, %s757_s22, %s1118_s25, %s1118_s25, %s1119_s17  }
 0x39b PF: > { %s785_s26 = sand.u32 1, %s1096_s18   ;;  %p1519_p13 = scmp.ne.s32.totalorder %s1515_s6, 0 }
 0x39c   : > { %p1520_p4 = scmp.ge.s32.totalorder %s1108_s21, 2  ;;  %s786_s29 = scalar_lea.sflag [#allocation4], %s785_s26 }
 0x39e   : > { %p937_p5 = pnand %p1520_p4, %p1519_p13 }
 0x3a0   : > { %p938_p7 = pneg %p937_p5 }
 0x3a2   : > { %1091 = dma.done.wait (%p938_p7), %s786_s29, 2048  }
 0x3a3   : > { %1093 = vsyncadd (%p938_p7), %s786_s29, 4294965248  ;;  %p18_p8 = scmp.ge.s32.totalorder %s1175_s24, 4   ;;  %s1521_s18 = smov %s1100_s19 }
 0x3a4   : > { %s1522_s19 = smov %s1104_s20  ;;  %s1523_s20 = smov %s1187_s27 }
 0x3a5   : > { %s1524_s21 = smov %s1175_s24  ;;  %20 = sbr.rel (!%p18_p8) target bundleno = 5 (0x5), region = 85 }
 0x3aa   :  { %791 = vsyncpa [#allocation3], 1 }
 0x3ab   :  { %793 = vsyncpa [#allocation3 + $0x1], 1 }
 0x3ac   :  { %794 = vsyncpa [#allocation4], 1 }
 0x3ad   :  { %796 = vsyncpa [#allocation4 + $0x1], 1 }

</bundles_post_ra>
